<compile_context>
chip_gen: v7x
topology: tpu7x:2x2x1
jax: 0.10.0
libtpu: 0.0.40
codegen_flags: <defaults>
</compile_context>

<pallas_src>
import functools

import jax
import jax.numpy as jnp
from jax.experimental import pallas as pl
from jax.experimental.pallas import tpu as pltpu

_HP = jax.lax.Precision.HIGHEST


def _round_up(x: int, m: int) -> int:
    return (x + m - 1) // m * m


def _batch_tiling(B: int, batch_tile: int):
    """Pick (TB, num_blocks).

    * num_blocks >= 2 whenever B >= 256 so v7x's two TensorCores both get work
      (harmless on v5e/v6e) and stores of tile i overlap compute of tile i+1.
    * TB is a multiple of 128 when num_blocks > 1 so the transposed output
      block (last dim = TB) stays fully lane-dense (unmasked vst).
    * Even split bounds the padded-batch waste to < 128 rows per block
      (instead of up to batch_tile-1 rows with naive round-up).
    """
    if B < 256:
        return _round_up(max(B, 8), 8), 1
    num_blocks = max(2, pl.cdiv(B, batch_tile))
    tb = _round_up(pl.cdiv(B, num_blocks), 128)
    return tb, pl.cdiv(B, tb)


def actor_forward_kernel(x_ref, w1_ref, b1_ref, w23_ref, b23_ref,
                         w4t_ref, b4t_ref, out_ref, *, compute_dtype):
    # Layer 1: Linear(state_dim -> mid) + ReLU.  bf16 operands (pre-cast in
    # the wrapper), f32 accumulation, f32 epilogue.
    h = jnp.dot(x_ref[...], w1_ref[...], preferred_element_type=jnp.float32)
    h = jnp.maximum(h + b1_ref[...], 0.0)
    # Fused layers 2+3 (no nonlinearity between them in the module) + ReLU.
    h = jnp.dot(h.astype(compute_dtype), w23_ref[...],
                preferred_element_type=jnp.float32)
    h = jnp.maximum(h + b23_ref[...], 0.0)
    # Layer 4, computed transposed: out[a, t] = sum_m w4t[a, m] * h[t, m].
    # Output block is [action_pad, TB] -> batch rides the 128-lane axis, so the
    # store is lane-dense with no padded-lane write amplification.
    o = jax.lax.dot_general(
        w4t_ref[...], h.astype(compute_dtype),
        dimension_numbers=(((1,), (1,)), ((), ())),
        preferred_element_type=jnp.float32)
    out_ref[...] = jnp.tanh(o + b4t_ref[...])


def actor_sac_forward(state, params, *, use_bf16=True, batch_tile=1024):
    """state: [B, state_dim] f32. params: dict of (W[in,out], b[1,out]).
    Returns tanh policy mean, [B, action_dim] f32."""
    (w1, b1), (w2, b2), (w3, b3), (w4, b4) = (
        params["l1"], params["l2"], params["l3"], params["l4"])
    B, state_dim = state.shape
    mid = w1.shape[1]
    action_dim = w4.shape[1]
    compute_dtype = jnp.bfloat16 if use_bf16 else jnp.float32

    # ---- Parameter prep (f32, once per parameter set in real training) ----
    # Fuse l2 -> l3 (exact up to f32 rounding):  (h @ w2 + b2) @ w3 + b3
    #   == h @ (w2 @ w3) + (b2 @ w3 + b3)
    w23 = jnp.dot(w2, w3, precision=_HP)
    b23 = jnp.dot(b2, w3, precision=_HP) + b3
    # Transposed, sublane-padded output layer: [a_pad, mid] weights and
    # [a_pad, 1] bias (padded rows are zero -> tanh(0)=0, dropped by wrapper).
    a_pad = _round_up(action_dim, 8)
    w4t = jnp.pad(w4.T, ((0, a_pad - action_dim), (0, 0)))        # [a_pad, mid]
    b4t = jnp.pad(b4.T, ((0, a_pad - action_dim), (0, 0)))        # [a_pad, 1]
    # Dot operands in compute dtype (halves weight/input DMA in bf16 mode);
    # biases and epilogue stay strictly f32 (v5e VPU/EUP have no bf16).
    w1c = w1.astype(compute_dtype)
    w23c = w23.astype(compute_dtype)
    w4tc = w4t.astype(compute_dtype)

    # ---- Batch tiling ----
    TB, num_blocks = _batch_tiling(B, batch_tile)
    B_pad = TB * num_blocks
    x = state.astype(compute_dtype)          # cast in wrapper, not in kernel
    if B_pad != B:
        x = jnp.pad(x, ((0, B_pad - B), (0, 0)))

    def weight_spec(shape):
        return pl.BlockSpec(shape, lambda i: (0, 0))  # VMEM-resident

    grid_spec = pltpu.PrefetchScalarGridSpec(
        num_scalar_prefetch=0,
        grid=(num_blocks,),
        in_specs=[
            pl.BlockSpec((TB, state_dim), lambda i: (i, 0)),   # state tile
            weight_spec((state_dim, mid)),                     # w1
            weight_spec((1, mid)),                             # b1
            weight_spec((mid, mid)),                           # w23
            weight_spec((1, mid)),                             # b23
            weight_spec((a_pad, mid)),                         # w4^T (padded)
            weight_spec((a_pad, 1)),                           # b4^T (padded)
        ],
        # Transposed output: [a_pad, B_pad], batch on the lane axis.
        out_specs=pl.BlockSpec((a_pad, TB), lambda i: (0, i)),
    )

    flops = 2 * B_pad * (state_dim * mid + mid * mid + mid * a_pad)
    bytes_accessed = (
        int(x.size) * x.dtype.itemsize
        + sum(int(a.size) * a.dtype.itemsize
              for a in (w1c, b1, w23c, b23, w4tc, b4t))
        + a_pad * B_pad * 4)
    cost = pl.CostEstimate(flops=flops,
                           transcendentals=B_pad * a_pad,
                           bytes_accessed=bytes_accessed)

    out = pl.pallas_call(
        functools.partial(actor_forward_kernel, compute_dtype=compute_dtype),
        out_shape=jax.ShapeDtypeStruct((a_pad, B_pad), jnp.float32),
        grid_spec=grid_spec,
        compiler_params=pltpu.CompilerParams(
            dimension_semantics=("parallel",)),
        cost_estimate=cost,
    )(x, w1c, b1, w23c, b23, w4tc, b4t)

    # Drop padded action rows / padded batch lanes, restore [B, action_dim].
    return out[:action_dim, :B].T


# ---------------------------- test scaffolding ----------------------------
def init_linear(key, in_dim, out_dim):
    """Mirror torch.nn.Linear default init (uniform +/- 1/sqrt(in_dim))."""
    kw, kb = jax.random.split(key)
    bound = 1.0 / (in_dim ** 0.5)
    w = jax.random.uniform(kw, (in_dim, out_dim), jnp.float32, -bound, bound)
    b = jax.random.uniform(kb, (1, out_dim), jnp.float32, -bound, bound)
    return w, b


def make_params(key, state_dim, mid_dim, action_dim):
    k1, k2, k3, k4 = jax.random.split(key, 4)
    return {
        "l1": init_linear(k1, state_dim, mid_dim),   # net_state Linear 1
        "l2": init_linear(k2, mid_dim, mid_dim),     # net_state Linear 2
        "l3": init_linear(k3, mid_dim, mid_dim),     # net_action_avg Linear 1
        "l4": init_linear(k4, mid_dim, action_dim),  # net_action_avg Linear 2
    }


def reference_forward(state, params):
    (w1, b1), (w2, b2), (w3, b3), (w4, b4) = (
        params["l1"], params["l2"], params["l3"], params["l4"])
    h = jnp.maximum(jnp.dot(state, w1, precision=_HP) + b1, 0.0)
    h = jnp.dot(h, w2, precision=_HP) + b2          # no ReLU (matches module)
    h = jnp.maximum(jnp.dot(h, w3, precision=_HP) + b3, 0.0)
    h = jnp.dot(h, w4, precision=_HP) + b4
    return jnp.tanh(h)


if __name__ == "__main__":
    # Small shapes consistent with the module: state_dim=16, mid_dim=128
    # (lane-friendly), action_dim=8, num_layer=3.
    STATE_DIM, MID_DIM, ACTION_DIM = 16, 128, 8

    key = jax.random.PRNGKey(0)
    k_params, k_state, k_state2 = jax.random.split(key, 3)
    params = make_params(k_params, STATE_DIM, MID_DIM, ACTION_DIM)

    # --- tiny single-block case (B=8) ---
    B = 8
    state = jax.random.normal(k_state, (B, STATE_DIM), jnp.float32)
    ref = reference_forward(state, params)

    # f32 path (l2/l3 fusion + transposed layer 4 only differ at rounding level).
    out_f32 = jax.block_until_ready(
        actor_sac_forward(state, params, use_bf16=False))
    assert out_f32.shape == (B, ACTION_DIM)
    assert jnp.allclose(out_f32, ref, atol=3e-4, rtol=3e-4)

    # Default bf16-MXU path: bf16 dot operands, f32 accumulation + f32 epilogue.
    out_bf16 = jax.block_until_ready(actor_sac_forward(state, params))
    assert out_bf16.shape == (B, ACTION_DIM)
    assert jnp.allclose(out_bf16, ref, atol=3e-2, rtol=3e-2)

    # --- medium batch exercising the multi-block / padded-batch path ---
    # B=300 -> TB=256, 2 grid steps, B_pad=512; padded rows/lanes dropped.
    B2 = 300
    state2 = jax.random.normal(k_state2, (B2, STATE_DIM), jnp.float32)
    ref2 = reference_forward(state2, params)
    out2 = jax.block_until_ready(actor_sac_forward(state2, params))
    assert out2.shape == (B2, ACTION_DIM)
    assert jnp.allclose(out2, ref2, atol=3e-2, rtol=3e-2)

    # TODO(synk): get_action / get_action_logprob (torch.normal / randn_like
    # sampling + log-prob) are stochastic paths outside forward(); fusing them
    # (pltpu.prng_seed / prng_random_bits) into this pallas_call would amortize
    # the per-call overhead for small-batch inference but is not done here.
    print("KERNEL_OK")
</pallas_src>

<mosaic_0001>
module attributes {stable_mosaic.version = 11 : i64} {
  func.func @actor_forward_kernel(%arg0: i32, %arg1: memref<8x16xf32, #tpu.memory_space<vmem>>, %arg2: memref<16x128xf32, #tpu.memory_space<vmem>>, %arg3: memref<1x128xf32, #tpu.memory_space<vmem>>, %arg4: memref<128x128xf32, #tpu.memory_space<vmem>>, %arg5: memref<1x128xf32, #tpu.memory_space<vmem>>, %arg6: memref<8x128xf32, #tpu.memory_space<vmem>>, %arg7: memref<8x1xf32, #tpu.memory_space<vmem>>, %arg8: memref<8x8xf32, #tpu.memory_space<vmem>>) attributes {dimension_semantics = [#tpu.dimension_semantics<parallel>], iteration_bounds = array<i64: 1>, scalar_prefetch = 0 : i64, scratch_operands = 0 : i64, tpu.core_type = #tpu.core_type<tc>, window_params = [{transform_indices = @transform_0, window_bounds = array<i64: 8, 16>}, {pipeline_mode = #tpu.pipeline_mode<synchronous>, transform_indices = @transform_1, window_bounds = array<i64: 16, 128>}, {pipeline_mode = #tpu.pipeline_mode<synchronous>, transform_indices = @transform_2, window_bounds = array<i64: 1, 128>}, {pipeline_mode = #tpu.pipeline_mode<synchronous>, transform_indices = @transform_3, window_bounds = array<i64: 128, 128>}, {pipeline_mode = #tpu.pipeline_mode<synchronous>, transform_indices = @transform_4, window_bounds = array<i64: 1, 128>}, {pipeline_mode = #tpu.pipeline_mode<synchronous>, transform_indices = @transform_5, window_bounds = array<i64: 8, 128>}, {pipeline_mode = #tpu.pipeline_mode<synchronous>, transform_indices = @transform_6, window_bounds = array<i64: 8, 1>}, {transform_indices = @transform_7, window_bounds = array<i64: 8, 8>}]} {
    %c0 = arith.constant 0 : index
    %c0_0 = arith.constant 0 : index
    %0 = vector.load %arg1[%c0, %c0_0] : memref<8x16xf32, #tpu.memory_space<vmem>>, vector<8x16xf32>
    %c0_1 = arith.constant 0 : index
    %c0_2 = arith.constant 0 : index
    %1 = vector.load %arg2[%c0_1, %c0_2] : memref<16x128xf32, #tpu.memory_space<vmem>>, vector<16x128xf32>
    %cst = arith.constant dense<0.000000e+00> : vector<8x128xf32>
    %2 = tpu.matmul %0, %1, %cst {dimension_numbers = #tpu.dot_dimension_numbers<[1], [0], [0], [1], [0, 0, 1, 1], [], []>} : vector<8x16xf32>, vector<16x128xf32>, vector<8x128xf32> -> vector<8x128xf32>
    %c0_3 = arith.constant 0 : index
    %c0_4 = arith.constant 0 : index
    %3 = vector.load %arg3[%c0_3, %c0_4] : memref<1x128xf32, #tpu.memory_space<vmem>>, vector<1x128xf32>
    %4 = vector.broadcast %3 : vector<1x128xf32> to vector<8x128xf32>
    %5 = arith.addf %2, %4 : vector<8x128xf32>
    %cst_5 = arith.constant 0.000000e+00 : f32
    %6 = vector.broadcast %cst_5 : f32 to vector<8x128xf32>
    %7 = arith.maximumf %5, %6 : vector<8x128xf32>
    %c0_6 = arith.constant 0 : index
    %c0_7 = arith.constant 0 : index
    %8 = vector.load %arg4[%c0_6, %c0_7] : memref<128x128xf32, #tpu.memory_space<vmem>>, vector<128x128xf32>
    %cst_8 = arith.constant dense<0.000000e+00> : vector<8x128xf32>
    %9 = tpu.matmul %7, %8, %cst_8 {dimension_numbers = #tpu.dot_dimension_numbers<[1], [0], [0], [1], [0, 0, 1, 1], [], []>} : vector<8x128xf32>, vector<128x128xf32>, vector<8x128xf32> -> vector<8x128xf32>
    %c0_9 = arith.constant 0 : index
    %c0_10 = arith.constant 0 : index
    %10 = vector.load %arg5[%c0_9, %c0_10] : memref<1x128xf32, #tpu.memory_space<vmem>>, vector<1x128xf32>
    %11 = vector.broadcast %10 : vector<1x128xf32> to vector<8x128xf32>
    %12 = arith.addf %9, %11 : vector<8x128xf32>
    %cst_11 = arith.constant 0.000000e+00 : f32
    %13 = vector.broadcast %cst_11 : f32 to vector<8x128xf32>
    %14 = arith.maximumf %12, %13 : vector<8x128xf32>
    %c0_12 = arith.constant 0 : index
    %c0_13 = arith.constant 0 : index
    %15 = vector.load %arg6[%c0_12, %c0_13] : memref<8x128xf32, #tpu.memory_space<vmem>>, vector<8x128xf32>
    %cst_14 = arith.constant dense<0.000000e+00> : vector<8x8xf32>
    %16 = tpu.matmul %15, %14, %cst_14 {dimension_numbers = #tpu.dot_dimension_numbers<[1], [1], [0], [0], [0, 0, 1, 0], [], []>} : vector<8x128xf32>, vector<8x128xf32>, vector<8x8xf32> -> vector<8x8xf32>
    %c0_15 = arith.constant 0 : index
    %c0_16 = arith.constant 0 : index
    %17 = vector.load %arg7[%c0_15, %c0_16] : memref<8x1xf32, #tpu.memory_space<vmem>>, vector<8x1xf32>
    %18 = vector.broadcast %17 : vector<8x1xf32> to vector<8x8xf32>
    %19 = arith.addf %16, %18 : vector<8x8xf32>
    %20 = math.tanh %19 : vector<8x8xf32>
    %c0_17 = arith.constant 0 : index
    %c0_18 = arith.constant 0 : index
    %21 = vector.load %arg8[%c0_17, %c0_18] : memref<8x8xf32, #tpu.memory_space<vmem>>, vector<8x8xf32>
    tpu.vector_store %arg8[%c0_17, %c0_18], %20 {strides = array<i32>} : memref<8x8xf32, #tpu.memory_space<vmem>>, vector<8x8xf32>,
    return
  }
  func.func @transform_0(%arg0: i32) -> (i32, i32) {
    %c0_i32 = arith.constant 0 : i32
    %c0_i32_0 = arith.constant 0 : i32
    return %arg0, %c0_i32 : i32, i32
  }
  func.func @transform_1(%arg0: i32) -> (i32, i32) {
    %c0_i32 = arith.constant 0 : i32
    %c0_i32_0 = arith.constant 0 : i32
    %c0_i32_1 = arith.constant 0 : i32
    return %c0_i32, %c0_i32_0 : i32, i32
  }
  func.func @transform_2(%arg0: i32) -> (i32, i32) {
    %c0_i32 = arith.constant 0 : i32
    %c0_i32_0 = arith.constant 0 : i32
    %c0_i32_1 = arith.constant 0 : i32
    return %c0_i32, %c0_i32_0 : i32, i32
  }
  func.func @transform_3(%arg0: i32) -> (i32, i32) {
    %c0_i32 = arith.constant 0 : i32
    %c0_i32_0 = arith.constant 0 : i32
    %c0_i32_1 = arith.constant 0 : i32
    return %c0_i32, %c0_i32_0 : i32, i32
  }
  func.func @transform_4(%arg0: i32) -> (i32, i32) {
    %c0_i32 = arith.constant 0 : i32
    %c0_i32_0 = arith.constant 0 : i32
    %c0_i32_1 = arith.constant 0 : i32
    return %c0_i32, %c0_i32_0 : i32, i32
  }
  func.func @transform_5(%arg0: i32) -> (i32, i32) {
    %c0_i32 = arith.constant 0 : i32
    %c0_i32_0 = arith.constant 0 : i32
    %c0_i32_1 = arith.constant 0 : i32
    return %c0_i32, %c0_i32_0 : i32, i32
  }
  func.func @transform_6(%arg0: i32) -> (i32, i32) {
    %c0_i32 = arith.constant 0 : i32
    %c0_i32_0 = arith.constant 0 : i32
    %c0_i32_1 = arith.constant 0 : i32
    return %c0_i32, %c0_i32_0 : i32, i32
  }
  func.func @transform_7(%arg0: i32) -> (i32, i32) {
    %c0_i32 = arith.constant 0 : i32
    %c0_i32_0 = arith.constant 0 : i32
    return %c0_i32, %arg0 : i32, i32
  }
}

</mosaic_0001>

<bundles_post_ra>
// kernel: tpu_custom_call.1
= control target key start
LH: loop header
LB: loop body
LE: loop exit
PB: predicated region body
PF: predicated region fallthrough
CT: control target
= control target key end

     0   :  { %12 = vsyncpa [#allocation3], 0  ;;  %s667_s0 = inlined_call_operand.vmem [shape: f32[8,16], index: 0, kind: input, shape index: {}]   ;;  %s668_s1 = inlined_call_operand.hbm [shape: f32[16,128], index: 1, kind: input, shape index: {}]   ;;  %s669_s2 = inlined_call_operand.hbm [shape: f32[1,128], index: 2, kind: input, shape index: {}]   ;;  %s670_s3 = inlined_call_operand.hbm [shape: f32[128,128], index: 3, kind: input, shape index: {}]   ;;  %s671_s4 = inlined_call_operand.vmem [shape: f32[1,128], index: 4, kind: input, shape index: {}]   ;;  %s672_s5 = inlined_call_operand.vmem [shape: f32[8,128], index: 5, kind: input, shape index: {}]   ;;  %s673_s6 = inlined_call_operand.vmem [shape: f32[8,1], index: 6, kind: input, shape index: {}]   ;;  %s674_s7 = inlined_call_operand.hbm [shape: f32[8,8], index: 7, kind: output, shape index: {}]  }
   0x1   :  { %13 = vsyncpa [#allocation6], 0 }
   0x2   :  { %14 = vsyncpa [#allocation4], 0  ;;  %s547_s24 = smov [#allocation5]   ;;  %s548_s26 = smov [#allocation2]  }
   0x3   :  { %s35_s25 = sshll.u32 %s547_s24, 4  ;;  %s22_s27 = sshll.u32 %s548_s26, 4  ;;  %s36_s25 = int_to_ptr.vmem [resolvable:$true] %s35_s25  ;;  %s597_s27 = int_to_ptr.vmem [resolvable:$true] %s22_s27 }
   0x4   :  { %s453_s30 = scalar_lea.hbm %s669_s2, 16 }
   0x5   :  { %p454_p0 = scmp.ne.s32.totalorder %s669_s2, %s453_s30  ;;  %p457_p1 = scmp.lt.u32.totalorder %s453_s30, %s669_s2 }
   0x7   :  { %p459_p2 = pnand %p457_p1, %p454_p0 }
   0x9   :  { %462 = shalt.err (!%p459_p2)
}
   0xa   :  { %s463_s12 = scalar_lea.vmem %s36_s25, 16  ;;  %s467_s13 = scalar_lea.vmem %s36_s25, 32 }
   0xb   :  { %p464_p3 = scmp.ne.s32.totalorder %s36_s25, %s463_s12  ;;  %p468_p4 = scmp.lt.s32.totalorder %s36_s25, %s36_s25 }
   0xc   :  { %p469_p5 = scmp.lt.s32.totalorder %s467_s13, %s463_s12 }
   0xe   :  { %p470_p6 = por %p469_p5, %p468_p4 }
  0x10   :  { %p471_p7 = pnand %p470_p6, %p464_p3 }
  0x12   :  { %474 = shalt.err (!%p471_p7)
}
  0x13   :  { %38 = dma.hbm_to_vmem [thread:$0]  %s669_s2, 16, %s36_s25, [#allocation6]  }
  0x14   :  { %s475_s18 = scalar_lea.hbm %s668_s1, 256 }
  0x15   :  { %p476_p8 = scmp.ne.s32.totalorder %s668_s1, %s475_s18  ;;  %p479_p9 = scmp.lt.u32.totalorder %s475_s18, %s668_s1 }
  0x17   :  { %p481_p10 = pnand %p479_p9, %p476_p8 }
  0x19   :  { %484 = shalt.err (!%p481_p10)
}
  0x1a   :  { %s485_s23 = scalar_lea.vmem %s597_s27, 256  ;;  %p490_p12 = scmp.lt.s32.totalorder %s597_s27, %s597_s27 }
  0x1b   :  { %p486_p11 = scmp.ne.s32.totalorder %s597_s27, %s485_s23  ;;  %p491_p13 = scmp.lt.s32.totalorder %s485_s23, %s485_s23 }
  0x1d   :  { %p492_p0 = por %p491_p13, %p490_p12 }
  0x1f   :  { %p493_p1 = pnand %p492_p0, %p486_p11 }
  0x21   :  { %496 = shalt.err (!%p493_p1)
}
  0x22   :  { %s549_s2 = smov 128   ;;  %s550_s24 = smov 8  }
  0x23   :  { %28 = dma.hbm_to_vmem [thread:$0]  %s668_s1, 256, %s597_s27, [#allocation3], %s549_s2, %s549_s2, %s550_s24  }
  0x24   :  { %s551_s28 = smov [#allocation7]   ;;  %s497_s9 = scalar_lea.hbm %s670_s3, 2048 }
  0x25   :  { %s44_s29 = sshll.u32 %s551_s28, 4  ;;  %p498_p2 = scmp.ne.s32.totalorder %s670_s3, %s497_s9  ;;  %s45_s29 = int_to_ptr.vmem [resolvable:$true] %s44_s29 }
  0x26   :  { %p501_p3 = scmp.lt.u32.totalorder %s497_s9, %s670_s3 }
  0x28   :  { %p503_p4 = pnand %p501_p3, %p498_p2 }
  0x2a   :  { %506 = shalt.err (!%p503_p4)
}
  0x2b   :  { %s507_s14 = scalar_lea.vmem %s45_s29, 2048  ;;  %p512_p6 = scmp.lt.s32.totalorder %s45_s29, %s45_s29 }
  0x2c   :  { %p508_p5 = scmp.ne.s32.totalorder %s45_s29, %s507_s14  ;;  %p513_p7 = scmp.lt.s32.totalorder %s507_s14, %s507_s14 }
  0x2e   :  { %p514_p8 = por %p513_p7, %p512_p6 }
  0x30   :  { %p515_p9 = pnand %p514_p8, %p508_p5 }
  0x32   :  { %518 = shalt.err (!%p515_p9)
}
  0x33   :  { %50 = dma.hbm_to_vmem [thread:$0]  %s670_s3, 2048, %s45_s29, [#allocation6], %s549_s2, %s549_s2, %s550_s24  }
  0x34   :  { %541 = dma.done.wait [#allocation3], 256  }
  0x35   :  { %542 = vsyncadd [#allocation3], 4294967040 }
  0x36   :  { %543 = dma.done.wait [#allocation6], 2064  }
  0x37   :  { %544 = vsyncadd [#allocation6], 4294965232  ;;  %v552_v0 = vmov 0.0|0.0   ;;  %vm553_vm0 = vmmov 0   ;;  %v554_v1 = vmov 0.0   ;;  %v67_v2 = vld [vmem:[#allocation2] sm:$0xff] }
  0x38   :  { %413 = vmatprep.subr.bf16.mxu0 %v552_v0  ;;  %370 = vmatprep.mubr.msk.f32.mxu0 %vm553_vm0, %v554_v1  ;;  %v68_v3 = vld [vmem:[#allocation2 + $0x8] sm:$0xff]  ;;  %v151_v5 = vld [vmem:[#allocation7] sm:$0xff]  ;;  %v152_v6 = vld [vmem:[#allocation7 + $0x8] sm:$0xff]  ;;  %vm76_vm1 = vcmask 130048   ;;  %v555_v36 = vmov 0   ;;  %vm323_vm2 = vcmask 64512  }
  0x39   :  { %416 = vmatprep.subr.bf16.mxu1 %v552_v0  ;;  %405 = vmatprep.mubr.msk.f32.mxu1 %vm553_vm0, %v554_v1  ;;  %v414_v4 = vpack.c.bf16 %v68_v3, %v67_v2  ;;  %v153_v7 = vld [vmem:[#allocation7 + $0x10] sm:$0xff]  ;;  %v417_v8 = vpack.c.bf16 %v152_v6, %v151_v5  ;;  %v154_v9 = vld [vmem:[#allocation7 + $0x18] sm:$0xff]  ;;  %v155_v12 = vld [vmem:[#allocation7 + $0x20] sm:$0xff] }
  0x3a   :  { %v66_v10 = vld [vmem:[%s667_s0] sm:$0xff]  ;;  %v420_v11 = vpack.c.bf16 %v154_v9, %v153_v7  ;;  %v158_v16 = vld [vmem:[#allocation7 + $0x38] sm:$0xff]  ;;  %v159_v18 = vld [vmem:[#allocation7 + $0x40] sm:$0xff]  ;;  %450 = vset.pattern.permute.xlu0 %v555_v36 }
  0x3b   :  { %415 = vmatpush3.bf16.msra.mxu0 %v414_v4  ;;  %418 = vmatpush3.bf16.msra.mxu1 %v417_v8  ;;  %v156_v13 = vld [vmem:[#allocation7 + $0x28] sm:$0xff]  ;;  %v157_v15 = vld [vmem:[#allocation7 + $0x30] sm:$0xff]  ;;  %v162_v22 = vld [vmem:[#allocation7 + $0x58] sm:$0xff] }
  0x3c   :  { %408 = vmatprep.subr.mxu0 %v554_v1  ;;  %419 = vmatprep.subr.bf16.mxu1 %v552_v0  ;;  %v423_v14 = vpack.c.bf16 %v156_v13, %v155_v12  ;;  %v426_v17 = vpack.c.bf16 %v158_v16, %v157_v15  ;;  %v160_v19 = vld [vmem:[#allocation7 + $0x48] sm:$0xff]  ;;  %v161_v21 = vld [vmem:[#allocation7 + $0x50] sm:$0xff]  ;;  %v163_v24 = vld [vmem:[#allocation7 + $0x60] sm:$0xff] }
  0x3d   :  { %v429_v20 = vpack.c.bf16 %v160_v19, %v159_v18  ;;  %v432_v23 = vpack.c.bf16 %v162_v22, %v161_v21  ;;  %v164_v25 = vld [vmem:[#allocation7 + $0x68] sm:$0xff]  ;;  %v165_v27 = vld [vmem:[#allocation7 + $0x70] sm:$0xff]  ;;  %v166_v28 = vld [vmem:[#allocation7 + $0x78] sm:$0xff] }
  0x3e   :  { %371 = vmatmul.mubr.msk.f32.vlgmr.msra.gmra.mrb[0].mxu0 %vm76_vm1, %v66_v10  ;;  %v435_v26 = vpack.c.bf16 %v164_v25, %v163_v24  ;;  %v438_v29 = vpack.c.bf16 %v166_v28, %v165_v27  ;;  %v341_v30 = vld [vmem:[#allocation5] ss:$0 sm:$0xff]  ;;  %v246_v35 = vld [vmem:[%s673_s6] sm:$0xff]  ;;  %s556_s6 = smov [#allocation8]  }
  0x3f   :  { %410 = vmatprep.mubr.msk.f32.mxu0 %vm553_vm0, %v554_v1  ;;  %421 = vmatpush3.bf16.msra.mxu1 %v420_v11  ;;  %v343_v37 = vld [vmem:[%s671_s4] ss:$0 sm:$0xff]  ;;  %s331_s21 = sshll.u32 %s556_s6, 4  ;;  %s332_s21 = int_to_ptr.vmem [resolvable:$true] %s331_s21 }
  0x40   :  { %422 = vmatprep.subr.bf16.mxu1 %v552_v0  ;;  %249 = vperm.xlu0 %450, %v246_v35   ;;  %v245_v42 = vld [vmem:[%s672_s5] sm:$0xff]  ;;  %s519_s4 = scalar_lea.vmem %s332_s21, 128  ;;  %p524_p11 = scmp.lt.s32.totalorder %s332_s21, %s332_s21 }
  0x41   :  { %p520_p10 = scmp.ne.s32.totalorder %s332_s21, %s519_s4  ;;  %p525_p12 = scmp.lt.s32.totalorder %s519_s4, %s519_s4 }
  0x43   :  { %424 = vmatpush3.bf16.msra.mxu1 %v423_v14  ;;  %p526_p13 = por %p525_p12, %p524_p11 }
  0x44   :  { %425 = vmatprep.subr.bf16.mxu1 %v552_v0 }
  0x45   :  { %p527_p0 = pnand %p526_p13, %p520_p10 }
  0x47   :  { %427 = vmatpush3.bf16.msra.mxu1 %v426_v17 }
  0x48   :  { %428 = vmatprep.subr.bf16.mxu1 %v552_v0 }
  0x4b   :  { %430 = vmatpush3.bf16.msra.mxu1 %v429_v20 }
  0x4c   :  { %431 = vmatprep.subr.bf16.mxu1 %v552_v0 }
  0x4f   :  { %433 = vmatpush3.bf16.msra.mxu1 %v432_v23 }
  0x50   :  { %434 = vmatprep.subr.bf16.mxu1 %v552_v0 }
  0x53   :  { %436 = vmatpush3.bf16.msra.mxu1 %v435_v26 }
  0x54   :  { %437 = vmatprep.subr.bf16.mxu1 %v552_v0 }
  0x57   :  { %439 = vmatpush3.bf16.msra.mxu1 %v438_v29 }
  0xbf   :  { %v250_v43 = vpop.permute.xlu0 %249 }
 0x111   :  { %v146_v31 = vpop.f32.mrb[0].mxu0 }
 0x112   :  { %v147_v32 = vadd.f32 %v341_v30, %v146_v31  ;;  %v372_v33 = vpop.f32.mrb[1].mxu0 }
 0x114   :  { %v150_v34 = vmax.f32 %v147_v32, 0.0 }
 0x116   :  { %406 = vmatmul.mubr.f32.vlgmr.msra.gmra.mrb[0].mxu1 %v150_v34 }
 0x1e9   :  { %v240_v38 = vpop.f32.mrb[0].mxu1 }
 0x1ea   :  { %v241_v39 = vadd.f32 %v343_v37, %v240_v38  ;;  %v407_v40 = vpop.f32.mrb[1].mxu1 }
 0x1ec   :  { %v244_v41 = vmax.f32 %v241_v39, 0.0 }
 0x1ee   :  { %409 = vmatpush3.xpose.msra.mxu0 %v244_v41 }
 0x1f1   :  { %411 = vmatmul.mubr.f32.vlgmr.msra.gmra.mrb[2].mxu0 %v245_v42 }
 0x2c4   :  { %v318_v44 = vpop.f32.mrb[2].mxu0 }
 0x2c5   :  { %v319_v45 = vadd.f32 %v318_v44, %v250_v43  ;;  %v412_v46 = vpop.f32.mrb[3].mxu0 }
 0x2c7   :  { %451 = vtanh.f32 %v319_v45 }
 0x2d1   :  { %v452_v47 = vpop.eup %451 }
 0x2d2   :  { %324 = vst.msk [vmem:[#allocation8] sm:$0xff] %vm323_vm2, %v452_v47 }
 0x2d3   :  { %530 = shalt.err (!%p527_p0)
}
 0x2d4   :  { %s531_s23 = scalar_lea.hbm %s674_s7, 128 }
 0x2d5   :  { %p532_p1 = scmp.ne.s32.totalorder %s674_s7, %s531_s23  ;;  %p535_p2 = scmp.lt.u32.totalorder %s531_s23, %s674_s7 }
 0x2d7   :  { %p537_p3 = pnand %p535_p2, %p532_p1 }
 0x2d9   :  { %540 = shalt.err (!%p537_p3)
}
 0x2da   :  { %334 = dma.vmem_to_hbm [thread:$0]  %s332_s21, 128, %s674_s7, [#allocation4]  }
 0x2db   :  { %545 = dma.done.wait [#allocation4], 128  }
 0x2dc   :  { %546 = vsyncadd [#allocation4], 4294967168 }
 0x2dd   :  { %338 = vsyncpa [#allocation3], 1 }
 0x2de   :  { %339 = vsyncpa [#allocation6], 1 }
 0x2df   :  { %340 = vsyncpa [#allocation4], 1 }

</bundles_post_ra>
